<compile_context>
chip_gen: v6e
topology: v6e:2x2x1
jax: 0.10.0
libtpu: 0.0.40
codegen_flags: <defaults>
</compile_context>

<pallas_src>
import functools

import jax
import jax.numpy as jnp
from jax.experimental import pallas as pl
from jax.experimental.pallas import tpu as pltpu


IN_W = 32         # packed input slab width: [loc0, loc1, x(12), pad(2), eps(16)]
LOC_DIM = 128     # frequencies per coordinate -> 4*128 = 512-dim loc embedding
HID = 128         # fused [fc12 | fc11] hidden width (64 + 64)
LAT = 16          # latent dim
OUT_W = 128       # lane-dense fused output slab width

# output-slab column layout
_RECON = slice(0, 12)
_LOGITS = slice(12, 15)
_MU = slice(16, 32)
_LOGVAR = slice(32, 48)
_Z = slice(48, 64)


def savae_kernel(slab_ref, fsel_ref, w12_ref, w11_ref, bcat_ref,
                 wenc_ref, benc_ref, wdec_ref, bdec_ref, out_ref):
    dot = functools.partial(jnp.dot, preferred_element_type=jnp.float32)

    slab = slab_ref[...]                               # (T, 32) f32
    slab_bf = slab.astype(jnp.bfloat16)

    # ---- LocationEncoder: sinusoidal Fourier features (f32 elementwise) ----
    # Packed low-octave args:  lanes   0..63  = loc0 * f[0..63]
    #                          lanes  64..127 = loc1 * f[0..63]
    fsel = fsel_ref[...]                               # (2, 128) f32
    a_low = slab[:, 0:1] * fsel[0:1, :] + slab[:, 1:2] * fsel[1:2, :]  # (T,128)
    s_low = jnp.sin(a_low)                             # transcendental pass 1
    c_low = jnp.cos(a_low)                             # transcendental pass 2
    # High 4 octaves: f[k+64] = 16 * f[k]  ->  4 double-angle steps (VPU only):
    #   sin(2t) = 2*s*c,  cos(2t) = 1 - 2*s*s
    s, c = s_low, c_low
    for _ in range(4):
        s, c = 2.0 * s * c, 1.0 - 2.0 * s * s
    s_high, c_high = s, c

    # ---- fused [fc12(loc_embed) | fc11(x)]: accumulated MXU dots ----------
    # (w12 rows are permuted in make_params to match the packed blocks; the
    #  constant-index-map weight blocks stay resident in VMEM across steps.)
    w12 = w12_ref[...]                                 # (512, 128) bf16
    x_concat = (dot(s_low.astype(jnp.bfloat16), w12[0:128, :])
                + dot(c_low.astype(jnp.bfloat16), w12[128:256, :])
                + dot(s_high.astype(jnp.bfloat16), w12[256:384, :])
                + dot(c_high.astype(jnp.bfloat16), w12[384:512, :])
                + dot(slab_bf, w11_ref[...])           # (T,32)x(32,128) fc11
                + bcat_ref[...])                       # (T, 128) f32

    # ---- encode: LeakyReLU(0.2) then fused fc21|fc22 ----------------------
    h1 = jnp.where(x_concat >= 0.0, x_concat, 0.2 * x_concat)           # f32
    enc = dot(h1.astype(jnp.bfloat16), wenc_ref[...]) + benc_ref[...]   # (T, 32)
    mu = enc[:, 0:LAT]
    logvar = enc[:, LAT:2 * LAT]

    # ---- reparameterize (eps is packed in the input slab, cols 16..31) ----
    std = jnp.exp(0.5 * logvar)
    z = mu + slab[:, 16:32] * std                                        # (T, 16)

    # ---- fused decode + classifier ----------------------------------------
    dec = dot(z.astype(jnp.bfloat16), wdec_ref[...]) + bdec_ref[...]     # (T, 16)
    # Exact sigmoid on the recon lanes only (lane mask instead of sub-lane
    # slices); cols 12..14 stay raw logits, col 15 is a zero weight column.
    sig = 1.0 / (1.0 + jnp.exp(-dec))
    lane = jax.lax.broadcasted_iota(jnp.int32, dec.shape, 1)
    dec_out = jnp.where(lane < 12, sig, dec)                             # (T, 16)

    # ---- single lane-dense output slab: one unmasked 128-wide store -------
    t = dec.shape[0]
    out_ref[...] = jnp.concatenate(
        [dec_out, enc, z, jnp.zeros((t, OUT_W - 64), jnp.float32)], axis=1)


def _init_linear(key, in_dim, out_dim):
    """PyTorch-style uniform init; weight returned as (in, out)."""
    kw, kb = jax.random.split(key)
    bound = 1.0 / jnp.sqrt(jnp.float32(in_dim))
    w = jax.random.uniform(kw, (in_dim, out_dim), jnp.float32, -bound, bound)
    b = jax.random.uniform(kb, (1, out_dim), jnp.float32, -bound, bound)
    return w, b


def make_params(key):
    keys = jax.random.split(key, 6)
    w11, b11 = _init_linear(keys[0], 12, 64)
    w12, b12 = _init_linear(keys[1], 512, 64)
    w21, b21 = _init_linear(keys[2], 128, 16)
    w22, b22 = _init_linear(keys[3], 128, 16)
    w3, b3 = _init_linear(keys[4], 16, 12)
    wc, bc = _init_linear(keys[5], 16, 3)

    p = {}

    # Canonical (placeholder) loc_embed ordering (512 rows):
    #   [sin(loc0*f[0..127]) | cos(loc0*f) | sin(loc1*f) | cos(loc1*f)]
    # fc12 output -> fused hidden cols 0:64, fc11 output -> cols 64:128.
    w12c = jnp.zeros((4 * LOC_DIM, HID), jnp.float32).at[:, 0:64].set(w12)
    # Row permutation matching the kernel's packed feature blocks:
    #   rows   0:128  [sin loc0 f[0:64]   | sin loc1 f[0:64]  ]
    #   rows 128:256  [cos loc0 f[0:64]   | cos loc1 f[0:64]  ]
    #   rows 256:384  [sin loc0 f[64:128] | sin loc1 f[64:128]]
    #   rows 384:512  [cos loc0 f[64:128] | cos loc1 f[64:128]]
    w12p = jnp.concatenate([
        w12c[0:64], w12c[256:320],       # sin low
        w12c[128:192], w12c[384:448],    # cos low
        w12c[64:128], w12c[320:384],     # sin high
        w12c[192:256], w12c[448:512],    # cos high
    ], axis=0)
    p["w12"] = w12p.astype(jnp.bfloat16)                               # (512,128)

    # fc11 folded into a K=32 matmul against the packed input slab:
    # slab cols [0:2]=loc, [2:14]=x features, [14:16]=pad, [16:32]=eps.
    p["w11"] = (jnp.zeros((IN_W, HID), jnp.float32)
                .at[2:14, 64:128].set(w11)).astype(jnp.bfloat16)       # (32,128)
    p["bcat"] = jnp.concatenate([b12, b11], axis=1)                    # (1,128) f32

    # fused encoder head: [fc21 | fc22]
    p["wenc"] = jnp.concatenate([w21, w22], axis=1).astype(jnp.bfloat16)  # (128,32)
    p["benc"] = jnp.concatenate([b21, b22], axis=1)                    # (1,32) f32

    # fused decoder + classifier head (col 15 intentionally zero)
    p["wdec"] = (jnp.zeros((LAT, 16), jnp.float32)
                 .at[:, 0:12].set(w3)
                 .at[:, 12:15].set(wc)).astype(jnp.bfloat16)           # (16,16)
    p["bdec"] = (jnp.zeros((1, 16), jnp.float32)
                 .at[:, 0:12].set(b3)
                 .at[:, 12:15].set(bc))                                # (1,16) f32

    # Bounded log-spaced frequency ladder f[k] = 2^(k/16), k = 0..127
    # (exponents in [0, 8)).  fsel packs the LOW 4 octaves for both coords:
    #   row 0 = [f[0:64] | zeros],  row 1 = [zeros | f[0:64]]
    freqs = 2.0 ** (jnp.arange(LOC_DIM, dtype=jnp.float32) / 16.0)
    f_low = freqs[0:64]
    p["fsel"] = (jnp.zeros((2, LOC_DIM), jnp.float32)
                 .at[0, 0:64].set(f_low)
                 .at[1, 64:128].set(f_low))
    return p


def _round_up(n, m):
    return (n + m - 1) // m * m


def savae_forward(x, eps, params, tile_n=2048):
    """x: (N, 14) [2 location cols + 12 feature cols]; eps: (N, 16)."""
    N = x.shape[0]
    n_pad8 = _round_up(N, 8)

    # Choose the tiling: >=2 grid steps whenever N allows (so v7x's two
    # TensorCores both get work via the "parallel" axis); tile is a multiple
    # of 8 sublanes, capped near the requested tile_n.
    steps = max(1, pl.cdiv(n_pad8, tile_n))
    if n_pad8 >= 16:
        steps = max(steps, 2)
    tile_n = _round_up(pl.cdiv(n_pad8, steps), 8)
    Np = tile_n * steps

    # ---- ONE packed (Np, 32) f32 input slab (layout plumbing in wrapper) ----
    # cols: [loc0, loc1, x0..x11, pad, pad, eps0..eps15]
    slab = (jnp.zeros((Np, IN_W), jnp.float32)
            .at[:N, 0:14].set(x.astype(jnp.float32))
            .at[:N, 16:32].set(eps.astype(jnp.float32)))

    def whole(shape):
        return pl.BlockSpec(shape, lambda i: (0, 0))

    flops = 2 * Np * (4 * HID * HID + IN_W * HID + HID * 2 * LAT + LAT * 16)
    transcendentals = Np * (2 * LOC_DIM + LAT + 16)
    bytes_accessed = (Np * (IN_W + OUT_W) * 4
                      + (4 * LOC_DIM * HID + IN_W * HID
                         + HID * 2 * LAT + LAT * 16) * 2
                      + (HID + 2 * LAT + 16 + 2 * LOC_DIM) * 4)

    out = pl.pallas_call(
        savae_kernel,
        out_shape=jax.ShapeDtypeStruct((Np, OUT_W), jnp.float32),
        grid_spec=pltpu.PrefetchScalarGridSpec(
            num_scalar_prefetch=0,
            grid=(steps,),
            in_specs=[
                pl.BlockSpec((tile_n, IN_W), lambda i: (i, 0)),  # packed inputs
                whole((2, LOC_DIM)),           # packed low-octave freq rows
                whole((4 * LOC_DIM, HID)),     # fused fc12 weight (row-permuted)
                whole((IN_W, HID)),            # fused fc11 weight (K=32)
                whole((1, HID)),               # fused [b12|b11]
                whole((HID, 2 * LAT)),         # fused [w21|w22]
                whole((1, 2 * LAT)),           # fused [b21|b22]
                whole((LAT, 16)),              # fused [fc3|classifier] weight
                whole((1, 16)),                # fused [fc3|classifier] bias
            ],
            out_specs=pl.BlockSpec((tile_n, OUT_W), lambda i: (i, 0)),
        ),
        compiler_params=pltpu.CompilerParams(
            dimension_semantics=("parallel",),
            vmem_limit_bytes=32 * 1024 * 1024),
        cost_estimate=pl.CostEstimate(
            flops=flops,
            transcendentals=transcendentals,
            bytes_accessed=bytes_accessed),
    )(slab, params["fsel"],
      params["w12"], params["w11"], params["bcat"],
      params["wenc"], params["benc"], params["wdec"], params["bdec"])

    recon = out[:N, _RECON]
    logits = out[:N, _LOGITS]
    mu = out[:N, _MU]
    logvar = out[:N, _LOGVAR]
    z = out[:N, _Z]
    return recon, logits, mu, logvar, z


if __name__ == "__main__":
    key = jax.random.PRNGKey(0)
    k_param, k_x, k_eps = jax.random.split(key, 3)

    params = make_params(k_param)
    batch = 8
    # x: first 2 columns = location coords, next 12 = features (total 14)
    x = jax.random.normal(k_x, (batch, 14), jnp.float32)
    eps = jax.random.normal(k_eps, (batch, LAT), jnp.float32)  # randn_like(std)

    recon, logits, mu, logvar, z = savae_forward(x, eps, params)
    jax.block_until_ready((recon, logits, mu, logvar, z))

    assert recon.shape == (batch, 12)
    assert logits.shape == (batch, 3)
    assert mu.shape == (batch, LAT)
    assert logvar.shape == (batch, LAT)
    assert z.shape == (batch, LAT)
    assert bool(jnp.all(jnp.isfinite(recon)))
    assert bool(jnp.all(recon >= 0.0)) and bool(jnp.all(recon <= 1.0))
    print("KERNEL_OK")
</pallas_src>

<mosaic_0001>
module attributes {stable_mosaic.version = 11 : i64} {
  func.func @savae_kernel(%arg0: i32, %arg1: memref<8x32xf32, #tpu.memory_space<vmem>>, %arg2: memref<2x128xf32, #tpu.memory_space<vmem>>, %arg3: memref<512x128xbf16, #tpu.memory_space<vmem>>, %arg4: memref<32x128xbf16, #tpu.memory_space<vmem>>, %arg5: memref<1x128xf32, #tpu.memory_space<vmem>>, %arg6: memref<128x32xbf16, #tpu.memory_space<vmem>>, %arg7: memref<1x32xf32, #tpu.memory_space<vmem>>, %arg8: memref<16x16xbf16, #tpu.memory_space<vmem>>, %arg9: memref<1x16xf32, #tpu.memory_space<vmem>>, %arg10: memref<8x128xf32, #tpu.memory_space<vmem>>) attributes {dimension_semantics = [#tpu.dimension_semantics<parallel>], iteration_bounds = array<i64: 1>, scalar_prefetch = 0 : i64, scratch_operands = 0 : i64, tpu.core_type = #tpu.core_type<tc>, window_params = [{transform_indices = @transform_0, window_bounds = array<i64: 8, 32>}, {pipeline_mode = #tpu.pipeline_mode<synchronous>, transform_indices = @transform_1, window_bounds = array<i64: 2, 128>}, {pipeline_mode = #tpu.pipeline_mode<synchronous>, transform_indices = @transform_2, window_bounds = array<i64: 512, 128>}, {pipeline_mode = #tpu.pipeline_mode<synchronous>, transform_indices = @transform_3, window_bounds = array<i64: 32, 128>}, {pipeline_mode = #tpu.pipeline_mode<synchronous>, transform_indices = @transform_4, window_bounds = array<i64: 1, 128>}, {pipeline_mode = #tpu.pipeline_mode<synchronous>, transform_indices = @transform_5, window_bounds = array<i64: 128, 32>}, {pipeline_mode = #tpu.pipeline_mode<synchronous>, transform_indices = @transform_6, window_bounds = array<i64: 1, 32>}, {pipeline_mode = #tpu.pipeline_mode<synchronous>, transform_indices = @transform_7, window_bounds = array<i64: 16, 16>}, {pipeline_mode = #tpu.pipeline_mode<synchronous>, transform_indices = @transform_8, window_bounds = array<i64: 1, 16>}, {transform_indices = @transform_9, window_bounds = array<i64: 8, 128>}]} {
    %c0 = arith.constant 0 : index
    %c0_0 = arith.constant 0 : index
    %0 = vector.load %arg1[%c0, %c0_0] : memref<8x32xf32, #tpu.memory_space<vmem>>, vector<8x32xf32>
    %1 = arith.truncf %0 : vector<8x32xf32> to vector<8x32xbf16>
    %c0_1 = arith.constant 0 : index
    %c0_2 = arith.constant 0 : index
    %2 = vector.load %arg2[%c0_1, %c0_2] : memref<2x128xf32, #tpu.memory_space<vmem>>, vector<2x128xf32>
    %3 = vector.extract_strided_slice %0 {offsets = [0, 0], sizes = [8, 1], strides = [1, 1]} : vector<8x32xf32> to vector<8x1xf32>
    %4 = vector.extract_strided_slice %2 {offsets = [0, 0], sizes = [1, 128], strides = [1, 1]} : vector<2x128xf32> to vector<1x128xf32>
    %5 = vector.broadcast %3 : vector<8x1xf32> to vector<8x128xf32>
    %6 = vector.broadcast %4 : vector<1x128xf32> to vector<8x128xf32>
    %7 = arith.mulf %5, %6 : vector<8x128xf32>
    %8 = vector.extract_strided_slice %0 {offsets = [0, 1], sizes = [8, 1], strides = [1, 1]} : vector<8x32xf32> to vector<8x1xf32>
    %9 = vector.extract_strided_slice %2 {offsets = [1, 0], sizes = [1, 128], strides = [1, 1]} : vector<2x128xf32> to vector<1x128xf32>
    %10 = vector.broadcast %8 : vector<8x1xf32> to vector<8x128xf32>
    %11 = vector.broadcast %9 : vector<1x128xf32> to vector<8x128xf32>
    %12 = arith.mulf %10, %11 : vector<8x128xf32>
    %13 = arith.addf %7, %12 : vector<8x128xf32>
    %14 = math.sin %13 : vector<8x128xf32>
    %15 = math.cos %13 : vector<8x128xf32>
    %cst = arith.constant 2.000000e+00 : f32
    %16 = vector.broadcast %cst : f32 to vector<8x128xf32>
    %17 = arith.mulf %16, %14 : vector<8x128xf32>
    %18 = arith.mulf %17, %15 : vector<8x128xf32>
    %cst_3 = arith.constant 2.000000e+00 : f32
    %19 = vector.broadcast %cst_3 : f32 to vector<8x128xf32>
    %20 = arith.mulf %19, %14 : vector<8x128xf32>
    %21 = arith.mulf %20, %14 : vector<8x128xf32>
    %cst_4 = arith.constant 1.000000e+00 : f32
    %22 = vector.broadcast %cst_4 : f32 to vector<8x128xf32>
    %23 = arith.subf %22, %21 : vector<8x128xf32>
    %cst_5 = arith.constant 2.000000e+00 : f32
    %24 = vector.broadcast %cst_5 : f32 to vector<8x128xf32>
    %25 = arith.mulf %24, %18 : vector<8x128xf32>
    %26 = arith.mulf %25, %23 : vector<8x128xf32>
    %cst_6 = arith.constant 2.000000e+00 : f32
    %27 = vector.broadcast %cst_6 : f32 to vector<8x128xf32>
    %28 = arith.mulf %27, %18 : vector<8x128xf32>
    %29 = arith.mulf %28, %18 : vector<8x128xf32>
    %cst_7 = arith.constant 1.000000e+00 : f32
    %30 = vector.broadcast %cst_7 : f32 to vector<8x128xf32>
    %31 = arith.subf %30, %29 : vector<8x128xf32>
    %cst_8 = arith.constant 2.000000e+00 : f32
    %32 = vector.broadcast %cst_8 : f32 to vector<8x128xf32>
    %33 = arith.mulf %32, %26 : vector<8x128xf32>
    %34 = arith.mulf %33, %31 : vector<8x128xf32>
    %cst_9 = arith.constant 2.000000e+00 : f32
    %35 = vector.broadcast %cst_9 : f32 to vector<8x128xf32>
    %36 = arith.mulf %35, %26 : vector<8x128xf32>
    %37 = arith.mulf %36, %26 : vector<8x128xf32>
    %cst_10 = arith.constant 1.000000e+00 : f32
    %38 = vector.broadcast %cst_10 : f32 to vector<8x128xf32>
    %39 = arith.subf %38, %37 : vector<8x128xf32>
    %cst_11 = arith.constant 2.000000e+00 : f32
    %40 = vector.broadcast %cst_11 : f32 to vector<8x128xf32>
    %41 = arith.mulf %40, %34 : vector<8x128xf32>
    %42 = arith.mulf %41, %39 : vector<8x128xf32>
    %cst_12 = arith.constant 2.000000e+00 : f32
    %43 = vector.broadcast %cst_12 : f32 to vector<8x128xf32>
    %44 = arith.mulf %43, %34 : vector<8x128xf32>
    %45 = arith.mulf %44, %34 : vector<8x128xf32>
    %cst_13 = arith.constant 1.000000e+00 : f32
    %46 = vector.broadcast %cst_13 : f32 to vector<8x128xf32>
    %47 = arith.subf %46, %45 : vector<8x128xf32>
    %c0_14 = arith.constant 0 : index
    %c0_15 = arith.constant 0 : index
    %48 = vector.load %arg3[%c0_14, %c0_15] : memref<512x128xbf16, #tpu.memory_space<vmem>>, vector<512x128xbf16>
    %49 = arith.truncf %14 : vector<8x128xf32> to vector<8x128xbf16>
    %50 = vector.extract_strided_slice %48 {offsets = [0, 0], sizes = [128, 128], strides = [1, 1]} : vector<512x128xbf16> to vector<128x128xbf16>
    %cst_16 = arith.constant dense<0.000000e+00> : vector<8x128xf32>
    %51 = tpu.matmul %49, %50, %cst_16 {dimension_numbers = #tpu.dot_dimension_numbers<[1], [0], [0], [1], [0, 0, 1, 1], [], []>} : vector<8x128xbf16>, vector<128x128xbf16>, vector<8x128xf32> -> vector<8x128xf32>
    %52 = arith.truncf %15 : vector<8x128xf32> to vector<8x128xbf16>
    %53 = vector.extract_strided_slice %48 {offsets = [128, 0], sizes = [128, 128], strides = [1, 1]} : vector<512x128xbf16> to vector<128x128xbf16>
    %cst_17 = arith.constant dense<0.000000e+00> : vector<8x128xf32>
    %54 = tpu.matmul %52, %53, %cst_17 {dimension_numbers = #tpu.dot_dimension_numbers<[1], [0], [0], [1], [0, 0, 1, 1], [], []>} : vector<8x128xbf16>, vector<128x128xbf16>, vector<8x128xf32> -> vector<8x128xf32>
    %55 = arith.addf %51, %54 : vector<8x128xf32>
    %56 = arith.truncf %42 : vector<8x128xf32> to vector<8x128xbf16>
    %57 = vector.extract_strided_slice %48 {offsets = [256, 0], sizes = [128, 128], strides = [1, 1]} : vector<512x128xbf16> to vector<128x128xbf16>
    %cst_18 = arith.constant dense<0.000000e+00> : vector<8x128xf32>
    %58 = tpu.matmul %56, %57, %cst_18 {dimension_numbers = #tpu.dot_dimension_numbers<[1], [0], [0], [1], [0, 0, 1, 1], [], []>} : vector<8x128xbf16>, vector<128x128xbf16>, vector<8x128xf32> -> vector<8x128xf32>
    %59 = arith.addf %55, %58 : vector<8x128xf32>
    %60 = arith.truncf %47 : vector<8x128xf32> to vector<8x128xbf16>
    %61 = vector.extract_strided_slice %48 {offsets = [384, 0], sizes = [128, 128], strides = [1, 1]} : vector<512x128xbf16> to vector<128x128xbf16>
    %cst_19 = arith.constant dense<0.000000e+00> : vector<8x128xf32>
    %62 = tpu.matmul %60, %61, %cst_19 {dimension_numbers = #tpu.dot_dimension_numbers<[1], [0], [0], [1], [0, 0, 1, 1], [], []>} : vector<8x128xbf16>, vector<128x128xbf16>, vector<8x128xf32> -> vector<8x128xf32>
    %63 = arith.addf %59, %62 : vector<8x128xf32>
    %c0_20 = arith.constant 0 : index
    %c0_21 = arith.constant 0 : index
    %64 = vector.load %arg4[%c0_20, %c0_21] : memref<32x128xbf16, #tpu.memory_space<vmem>>, vector<32x128xbf16>
    %cst_22 = arith.constant dense<0.000000e+00> : vector<8x128xf32>
    %65 = tpu.matmul %1, %64, %cst_22 {dimension_numbers = #tpu.dot_dimension_numbers<[1], [0], [0], [1], [0, 0, 1, 1], [], []>} : vector<8x32xbf16>, vector<32x128xbf16>, vector<8x128xf32> -> vector<8x128xf32>
    %66 = arith.addf %63, %65 : vector<8x128xf32>
    %c0_23 = arith.constant 0 : index
    %c0_24 = arith.constant 0 : index
    %67 = vector.load %arg5[%c0_23, %c0_24] : memref<1x128xf32, #tpu.memory_space<vmem>>, vector<1x128xf32>
    %68 = vector.broadcast %67 : vector<1x128xf32> to vector<8x128xf32>
    %69 = arith.addf %66, %68 : vector<8x128xf32>
    %cst_25 = arith.constant 0.000000e+00 : f32
    %70 = vector.broadcast %cst_25 : f32 to vector<8x128xf32>
    %71 = arith.cmpf oge, %69, %70 : vector<8x128xf32>
    %cst_26 = arith.constant 2.000000e-01 : f32
    %72 = vector.broadcast %cst_26 : f32 to vector<8x128xf32>
    %73 = arith.mulf %72, %69 : vector<8x128xf32>
    %74 = arith.select %71, %69, %73 : vector<8x128xi1>, vector<8x128xf32>
    %75 = arith.truncf %74 : vector<8x128xf32> to vector<8x128xbf16>
    %c0_27 = arith.constant 0 : index
    %c0_28 = arith.constant 0 : index
    %76 = vector.load %arg6[%c0_27, %c0_28] : memref<128x32xbf16, #tpu.memory_space<vmem>>, vector<128x32xbf16>
    %cst_29 = arith.constant dense<0.000000e+00> : vector<8x32xf32>
    %77 = tpu.matmul %75, %76, %cst_29 {dimension_numbers = #tpu.dot_dimension_numbers<[1], [0], [0], [1], [0, 0, 1, 1], [], []>} : vector<8x128xbf16>, vector<128x32xbf16>, vector<8x32xf32> -> vector<8x32xf32>
    %c0_30 = arith.constant 0 : index
    %c0_31 = arith.constant 0 : index
    %78 = vector.load %arg7[%c0_30, %c0_31] : memref<1x32xf32, #tpu.memory_space<vmem>>, vector<1x32xf32>
    %79 = vector.broadcast %78 : vector<1x32xf32> to vector<8x32xf32>
    %80 = arith.addf %77, %79 : vector<8x32xf32>
    %81 = vector.extract_strided_slice %80 {offsets = [0, 0], sizes = [8, 16], strides = [1, 1]} : vector<8x32xf32> to vector<8x16xf32>
    %82 = vector.extract_strided_slice %80 {offsets = [0, 16], sizes = [8, 16], strides = [1, 1]} : vector<8x32xf32> to vector<8x16xf32>
    %cst_32 = arith.constant 5.000000e-01 : f32
    %83 = vector.broadcast %cst_32 : f32 to vector<8x16xf32>
    %84 = arith.mulf %83, %82 : vector<8x16xf32>
    %85 = math.exp %84 : vector<8x16xf32>
    %86 = vector.extract_strided_slice %0 {offsets = [0, 16], sizes = [8, 16], strides = [1, 1]} : vector<8x32xf32> to vector<8x16xf32>
    %87 = arith.mulf %86, %85 : vector<8x16xf32>
    %88 = arith.addf %81, %87 : vector<8x16xf32>
    %89 = arith.truncf %88 : vector<8x16xf32> to vector<8x16xbf16>
    %c0_33 = arith.constant 0 : index
    %c0_34 = arith.constant 0 : index
    %90 = vector.load %arg8[%c0_33, %c0_34] : memref<16x16xbf16, #tpu.memory_space<vmem>>, vector<16x16xbf16>
    %cst_35 = arith.constant dense<0.000000e+00> : vector<8x16xf32>
    %91 = tpu.matmul %89, %90, %cst_35 {dimension_numbers = #tpu.dot_dimension_numbers<[1], [0], [0], [1], [0, 0, 1, 1], [], []>} : vector<8x16xbf16>, vector<16x16xbf16>, vector<8x16xf32> -> vector<8x16xf32>
    %c0_36 = arith.constant 0 : index
    %c0_37 = arith.constant 0 : index
    %92 = vector.load %arg9[%c0_36, %c0_37] : memref<1x16xf32, #tpu.memory_space<vmem>>, vector<1x16xf32>
    %93 = vector.broadcast %92 : vector<1x16xf32> to vector<8x16xf32>
    %94 = arith.addf %91, %93 : vector<8x16xf32>
    %cst_38 = arith.constant 0.000000e+00 : f32
    %95 = vector.broadcast %cst_38 : f32 to vector<8x16xf32>
    %96 = arith.subf %95, %94 : vector<8x16xf32>
    %97 = math.exp %96 : vector<8x16xf32>
    %cst_39 = arith.constant 1.000000e+00 : f32
    %98 = vector.broadcast %cst_39 : f32 to vector<8x16xf32>
    %99 = arith.addf %98, %97 : vector<8x16xf32>
    %cst_40 = arith.constant 1.000000e+00 : f32
    %100 = vector.broadcast %cst_40 : f32 to vector<8x16xf32>
    %101 = arith.divf %100, %99 : vector<8x16xf32>
    %102 = tpu.iota {dimensions = array<i32: 1>} : vector<8x16xi32>
    %c12_i32 = arith.constant 12 : i32
    %103 = vector.broadcast %c12_i32 : i32 to vector<8x16xi32>
    %104 = arith.cmpi slt, %102, %103 : vector<8x16xi32>
    %105 = arith.select %104, %101, %94 : vector<8x16xi1>, vector<8x16xf32>
    %cst_41 = arith.constant 0.000000e+00 : f32
    %106 = vector.broadcast %cst_41 : f32 to vector<8x64xf32>
    %107 = tpu.concatenate %105, %80, %88, %106 in 1 : vector<8x16xf32>, vector<8x32xf32>, vector<8x16xf32>, vector<8x64xf32> -> vector<8x128xf32>
    %c0_42 = arith.constant 0 : index
    %c0_43 = arith.constant 0 : index
    %108 = vector.load %arg10[%c0_42, %c0_43] : memref<8x128xf32, #tpu.memory_space<vmem>>, vector<8x128xf32>
    tpu.vector_store %arg10[%c0_42, %c0_43], %107 {strides = array<i32>} : memref<8x128xf32, #tpu.memory_space<vmem>>, vector<8x128xf32>,
    return
  }
  func.func @transform_0(%arg0: i32) -> (i32, i32) {
    %c0_i32 = arith.constant 0 : i32
    %c0_i32_0 = arith.constant 0 : i32
    return %arg0, %c0_i32 : i32, i32
  }
  func.func @transform_1(%arg0: i32) -> (i32, i32) {
    %c0_i32 = arith.constant 0 : i32
    %c0_i32_0 = arith.constant 0 : i32
    %c0_i32_1 = arith.constant 0 : i32
    return %c0_i32, %c0_i32_0 : i32, i32
  }
  func.func @transform_2(%arg0: i32) -> (i32, i32) {
    %c0_i32 = arith.constant 0 : i32
    %c0_i32_0 = arith.constant 0 : i32
    %c0_i32_1 = arith.constant 0 : i32
    return %c0_i32, %c0_i32_0 : i32, i32
  }
  func.func @transform_3(%arg0: i32) -> (i32, i32) {
    %c0_i32 = arith.constant 0 : i32
    %c0_i32_0 = arith.constant 0 : i32
    %c0_i32_1 = arith.constant 0 : i32
    return %c0_i32, %c0_i32_0 : i32, i32
  }
  func.func @transform_4(%arg0: i32) -> (i32, i32) {
    %c0_i32 = arith.constant 0 : i32
    %c0_i32_0 = arith.constant 0 : i32
    %c0_i32_1 = arith.constant 0 : i32
    return %c0_i32, %c0_i32_0 : i32, i32
  }
  func.func @transform_5(%arg0: i32) -> (i32, i32) {
    %c0_i32 = arith.constant 0 : i32
    %c0_i32_0 = arith.constant 0 : i32
    %c0_i32_1 = arith.constant 0 : i32
    return %c0_i32, %c0_i32_0 : i32, i32
  }
  func.func @transform_6(%arg0: i32) -> (i32, i32) {
    %c0_i32 = arith.constant 0 : i32
    %c0_i32_0 = arith.constant 0 : i32
    %c0_i32_1 = arith.constant 0 : i32
    return %c0_i32, %c0_i32_0 : i32, i32
  }
  func.func @transform_7(%arg0: i32) -> (i32, i32) {
    %c0_i32 = arith.constant 0 : i32
    %c0_i32_0 = arith.constant 0 : i32
    %c0_i32_1 = arith.constant 0 : i32
    return %c0_i32, %c0_i32_0 : i32, i32
  }
  func.func @transform_8(%arg0: i32) -> (i32, i32) {
    %c0_i32 = arith.constant 0 : i32
    %c0_i32_0 = arith.constant 0 : i32
    %c0_i32_1 = arith.constant 0 : i32
    return %c0_i32, %c0_i32_0 : i32, i32
  }
  func.func @transform_9(%arg0: i32) -> (i32, i32) {
    %c0_i32 = arith.constant 0 : i32
    %c0_i32_0 = arith.constant 0 : i32
    return %arg0, %c0_i32 : i32, i32
  }
}

</mosaic_0001>

<bundles_post_ra>
// kernel: tpu_custom_call.1
= control target key start
LH: loop header
LB: loop body
LE: loop exit
PB: predicated region body
PF: predicated region fallthrough
CT: control target
= control target key end

     0   :  { %14 = vsyncpa [#allocation3], 0  ;;  %s1558_s0 = inlined_call_operand.vmem [shape: f32[8,32], index: 0, kind: input, shape index: {}]   ;;  %s1559_s1 = inlined_call_operand.vmem [shape: f32[2,128], index: 1, kind: input, shape index: {}]   ;;  %s1560_s2 = inlined_call_operand.hbm [shape: bf16[512,128], index: 2, kind: input, shape index: {}]   ;;  %s1561_s3 = inlined_call_operand.vmem [shape: bf16[32,128], index: 3, kind: input, shape index: {}]   ;;  %s1562_s4 = inlined_call_operand.vmem [shape: f32[1,128], index: 4, kind: input, shape index: {}]   ;;  %s1563_s5 = inlined_call_operand.vmem [shape: bf16[128,32], index: 5, kind: input, shape index: {}]   ;;  %s1564_s6 = inlined_call_operand.vmem [shape: f32[1,32], index: 6, kind: input, shape index: {}]   ;;  %s1565_s7 = inlined_call_operand.vmem [shape: bf16[16,16], index: 7, kind: input, shape index: {}]   ;;  %s1566_s8 = inlined_call_operand.vmem [shape: f32[1,16], index: 8, kind: input, shape index: {}]   ;;  %s1567_s9 = inlined_call_operand.hbm [shape: f32[8,128], index: 9, kind: output, shape index: {}]  }
   0x1   :  { %15 = vsyncpa [#allocation4], 0  ;;  %s1348_s30 = smov [#allocation2]  }
   0x2   :  { %s25_s10 = sshll.u32 %s1348_s30, 4  ;;  %s26_s10 = int_to_ptr.vmem [resolvable:$true] %s25_s10 }
   0x3   :  { %s1312_s11 = scalar_lea.vmem %s26_s10, 4096  ;;  %p1317_p1 = scmp.lt.s32.totalorder %s26_s10, %s26_s10 }
   0x4   :  { %p1313_p0 = scmp.ne.s32.totalorder %s26_s10, %s1312_s11  ;;  %p1318_p2 = scmp.lt.s32.totalorder %s1312_s11, %s1312_s11 }
   0x6   :  { %p1319_p3 = por %p1318_p2, %p1317_p1 }
   0x8   :  { %p1320_p4 = pnand %p1319_p3, %p1313_p0 }
   0xa   :  { %1323 = shalt.err (!%p1320_p4)
}
   0xb   :  { %s1349_s12 = smov 64   ;;  %s1350_s13 = smov 4  }
   0xc   :  { %31 = dma.hbm_to_vmem [thread:$0]  %s1560_s2, 4096, %s26_s10, [#allocation3], %s1349_s12, %s1349_s12, %s1350_s13  }
   0xd   :  { %1344 = dma.done.wait [#allocation3], 4096  }
   0xe   :  { %1345 = vsyncadd [#allocation3], 4294963200  ;;  %v1351_v0 = vmov 0   ;;  %v1421_v1 = vld [vmem:[%s1558_s0] sm:$0xff]  ;;  %v1352_v2 = vmov 1   ;;  %v1251_v3 = vld [vmem:[#allocation2 + $0x78] sm:$0xff]   ;;  %v56_v20 = vlaneseq }
   0xf   :  { %1249 = vset.pattern.permute.xlu0 %v1351_v0  ;;  %v1252_v4 = vld [vmem:[#allocation2 + $0x38] sm:$0xff]   ;;  %v1353_v5 = vmov 0.0   ;;  %v1253_v6 = vld [vmem:[#allocation2 + $0x70] sm:$0xff]   ;;  %v1255_v8 = vld [vmem:[#allocation2 + $0x68] sm:$0xff]   ;;  %vm1354_vm0 = vmmov 0   ;;  %s1364_s19 = smov [#allocation5]  }
  0x10   :  { %53 = vperm.xlu0 %1249, %v1421_v1   ;;  %1114 = vmatprep.subr.bf16.mxu0 %v1353_v5  ;;  %v1254_v7 = vld [vmem:[#allocation2 + $0x30] sm:$0xff]   ;;  %v1256_v9 = vld [vmem:[#allocation2 + $0x28] sm:$0xff]   ;;  %v1257_v10 = vld [vmem:[#allocation2 + $0x60] sm:$0xff]   ;;  %v57_v21 = vshrl.u32 %v56_v20, 7  ;;  %v1355_v42 = vmov 683565275  }
  0x11   :  { %1134 = vmatprep.subr.bf16.mxu1 %v1353_v5  ;;  %1115 = vmatpush3.bf16.msra.mxu0 %v1251_v3  ;;  %v1258_v11 = vld [vmem:[#allocation2 + $0x20] sm:$0xff]   ;;  %v1259_v12 = vld [vmem:[#allocation2 + $0x58] sm:$0xff]   ;;  %v1261_v14 = vld [vmem:[#allocation2 + $0x50] sm:$0xff]   ;;  %v1356_v44 = vmov 2475754826   ;;  %s999_s20 = sshll.u32 %s1364_s19, 4  ;;  %s1000_s20 = int_to_ptr.vmem [resolvable:$true] %s999_s20 }
  0x12   :  { %1135 = vmatpush3.bf16.msra.mxu1 %v1252_v4  ;;  %1116 = vmatprep.subr.bf16.mxu0 %v1353_v5  ;;  %v1260_v13 = vld [vmem:[#allocation2 + $0x18] sm:$0xff]   ;;  %v1262_v15 = vld [vmem:[#allocation2 + $0x10] sm:$0xff]   ;;  %v1263_v16 = vld [vmem:[#allocation2 + $0x48] sm:$0xff]   ;;  %v58_v22 = vsub.s32 0, %v57_v21  ;;  %v67_v23 = vsub.s32 1, %v57_v21  ;;  %p1329_p6 = scmp.lt.s32.totalorder %s1000_s20, %s1000_s20 }
  0x13   :  { %1136 = vmatprep.subr.bf16.mxu1 %v1353_v5  ;;  %1130 = vmatprep.mubr.msk.bf16.mxu0 %vm1354_vm0, %v1353_v5  ;;  %v1264_v17 = vld [vmem:[#allocation2 + $0x8] sm:$0xff]   ;;  %v1265_v18 = vld [vmem:[#allocation2 + $0x40] sm:$0xff]   ;;  %v1357_v47 = vmov 2131351028   ;;  %v1358_v50 = vmov 2102212464  }
  0x14   :  { %1250 = vset.pattern.permute.xlu0 %v1352_v2  ;;  %1150 = vmatprep.mubr.msk.bf16.mxu1 %vm1354_vm0, %v1353_v5  ;;  %v1266_v19 = vld [vmem:[#allocation2] sm:$0xff]   ;;  %v1359_v53 = vmov 920167782   ;;  %v1360_v56 = vmov 1326507024  }
  0x15   :  { %62 = vperm.xlu0 %1250, %v1421_v1   ;;  %1117 = vmatpush3.bf16.msra.mxu0 %v1253_v6  ;;  %v50_v24 = vld [vmem:[%s1559_s1] sm:$0x3]  ;;  %s1362_s1 = smov 16  }
  0x16   :  { %1137 = vmatpush3.bf16.msra.mxu1 %v1254_v7  ;;  %1118 = vmatprep.subr.bf16.mxu0 %v1353_v5  ;;  %v59_v26 = vrot.slane %v50_v24, %v58_v22  ;;  %v68_v27 = vrot.slane %v50_v24, %v67_v23 }
  0x17   :  { %1138 = vmatprep.subr.bf16.mxu1 %v1353_v5 }
  0x19   :  { %1119 = vmatpush3.bf16.msra.mxu0 %v1255_v8 }
  0x1a   :  { %1139 = vmatpush3.bf16.msra.mxu1 %v1256_v9  ;;  %1120 = vmatprep.subr.bf16.mxu0 %v1353_v5 }
  0x1b   :  { %1140 = vmatprep.subr.bf16.mxu1 %v1353_v5 }
  0x1d   :  { %1121 = vmatpush3.bf16.msra.mxu0 %v1257_v10 }
  0x1e   :  { %1141 = vmatpush3.bf16.msra.mxu1 %v1258_v11  ;;  %1122 = vmatprep.subr.bf16.mxu0 %v1353_v5 }
  0x1f   :  { %1142 = vmatprep.subr.bf16.mxu1 %v1353_v5 }
  0x21   :  { %1123 = vmatpush3.bf16.msra.mxu0 %v1259_v12 }
  0x22   :  { %1143 = vmatpush3.bf16.msra.mxu1 %v1260_v13  ;;  %1124 = vmatprep.subr.bf16.mxu0 %v1353_v5 }
  0x23   :  { %1144 = vmatprep.subr.bf16.mxu1 %v1353_v5 }
  0x25   :  { %1125 = vmatpush3.bf16.msra.mxu0 %v1261_v14 }
  0x26   :  { %1145 = vmatpush3.bf16.msra.mxu1 %v1262_v15  ;;  %1126 = vmatprep.subr.bf16.mxu0 %v1353_v5 }
  0x27   :  { %1146 = vmatprep.subr.bf16.mxu1 %v1353_v5 }
  0x29   :  { %1127 = vmatpush3.bf16.msra.mxu0 %v1263_v16 }
  0x2a   :  { %1147 = vmatpush3.bf16.msra.mxu1 %v1264_v17  ;;  %1128 = vmatprep.subr.bf16.mxu0 %v1353_v5 }
  0x2b   :  { %1148 = vmatprep.subr.bf16.mxu1 %v1353_v5 }
  0x2d   :  { %1129 = vmatpush3.bf16.msra.mxu0 %v1265_v18 }
  0x2e   :  { %1149 = vmatpush3.bf16.msra.mxu1 %v1266_v19  ;;  %1154 = vmatprep.subr.bf16.mxu0 %v1353_v5 }
  0x2f   :  { %1174 = vmatprep.subr.bf16.mxu1 %v1353_v5 }
  0x8b   :  { %v54_v25 = vpop.permute.xlu0 %53 }
  0x8c   :  { %v60_v29 = vmul.f32 %v59_v26, %v54_v25 }
  0x90   :  { %v63_v28 = vpop.permute.xlu0 %62 }
  0x91   :  { %v69_v30 = vmul.f32 %v68_v27, %v63_v28 }
  0x93   :  { %v1451_v31 = vadd.f32 %v69_v30, %v60_v29 }
  0x95   :  { %v74_v32 = vand.u32 2139095040, %v1451_v31  ;;  %v71_v36 = vand.u32 2147483647, %v1451_v31  ;;  %vm73_vm8 = vcmp.lt.s32.totalorder %v1451_v31, 0 }
  0x97   :  { %v75_v33 = vshrl.u32 %v74_v32, 23  ;;  %v78_v39 = vand.u32 8388607, %v71_v36  ;;  %vm72_vm9 = vcmp.le.f32.partialorder %v71_v36, 0.7853982 }
  0x99   :  { %v1008_v34 = vadd.s32 4294967169, %v75_v33  ;;  %v79_v58 = vor.u32 8388608, %v78_v39 }
  0x9b   :  { %v81_v35 = vadd.s32 1, %v1008_v34  ;;  %v119_v10 = vshll.u32 %v79_v58, 8 }
  0x9d   :  { %vm82_vm1 = vcmp.gt.s32.totalorder %v81_v35, 0 }
  0x9e   :  { %v83_v37 = vsel %vm82_vm1, %v81_v35, 0  ;;  %vm163_vm1 = vweird.f32 %v1451_v31 }
  0x9f   :  { %v85_v38 = vand.u32 31, %v83_v37  ;;  %v84_v41 = vshrl.u32 %v83_v37, 5 }
  0xa1   :  { %v86_v40 = vsub.s32 32, %v85_v38  ;;  %v88_v43 = vshll.u32 %v1355_v42, %v85_v38  ;;  %v91_v45 = vshll.u32 %v1356_v44, %v85_v38  ;;  %v94_v49 = vshll.u32 %v1357_v47, %v85_v38 }
  0xa2   :  { %v97_v52 = vshll.u32 %v1358_v50, %v85_v38  ;;  %v100_v55 = vshll.u32 %v1359_v53, %v85_v38  ;;  %vm103_vm2 = vcmp.lt.s32.totalorder %v84_v41, 1  ;;  %vm106_vm3 = vcmp.lt.s32.totalorder %v84_v41, 4 }
  0xa3   :  { %v89_v46 = vshrl.u32 %v1356_v44, %v86_v40  ;;  %v92_v48 = vshrl.u32 %v1357_v47, %v86_v40  ;;  %v95_v51 = vshrl.u32 %v1358_v50, %v86_v40  ;;  %v98_v54 = vshrl.u32 %v1359_v53, %v86_v40 }
  0xa4   :  { %v101_v57 = vshrl.u32 %v1360_v56, %v86_v40  ;;  %v87_v4 = vshrl.u32 %v1355_v42, %v86_v40  ;;  %vm105_vm4 = vcmp.lt.s32.totalorder %v84_v41, 3  ;;  %vm104_vm5 = vcmp.lt.s32.totalorder %v84_v41, 2 }
  0xa5   :  { %v90_v59 = vor.u32 %v89_v46, %v88_v43  ;;  %v93_v60 = vor.u32 %v92_v48, %v91_v45  ;;  %v96_v61 = vor.u32 %v95_v51, %v94_v49  ;;  %v99_v62 = vor.u32 %v98_v54, %v97_v52 }
  0xa6   :  { %v102_v63 = vor.u32 %v101_v57, %v100_v55 }
  0xa7   :  { %v108_v0 = vsel %vm106_vm3, %v96_v61, 2102212464  ;;  %v111_v2 = vsel %vm103_vm2, %v90_v59, %v93_v60  ;;  %v115_v3 = vsel %vm103_vm2, %v93_v60, %v96_v61  ;;  %v112_v6 = vsel %vm106_vm3, %v99_v62, 920167782 }
  0xa8   :  { %v116_v7 = vsel %vm106_vm3, %v102_v63, 1326507024  ;;  %v113_v8 = vsel %vm105_vm4, %v96_v61, %v112_v6  ;;  %v107_v11 = vsel %vm103_vm2, %v87_v4, %v90_v59  ;;  %v109_v12 = vsel %vm105_vm4, %v93_v60, %v108_v0  ;;  %v1267_v6 = vld [vmem:[#allocation2 + $0xb8] sm:$0xff]  }
  0xa9   :  { %v117_v9 = vsel %vm105_vm4, %v99_v62, %v116_v7  ;;  %v114_v13 = vsel %vm104_vm5, %v111_v2, %v113_v8  ;;  %v110_v19 = vsel %vm104_vm5, %v107_v11, %v109_v12  ;;  %v1268_v7 = vld [vmem:[#allocation2 + $0xf8] sm:$0xff]   ;;  %vm732_vm2 = vcmask 261120  }
  0xaa   :  { %v118_v14 = vsel %vm104_vm5, %v115_v3, %v117_v9  ;;  %v1460_v17 = vmul.u32.u64.low %v119_v10, %v114_v13  ;;  %v1461_v18 = vmul.u32.u64.high %v119_v10, %v114_v13, %v1460_v17  ;;  %v126_v22 = vmul.u32 %v119_v10, %v110_v19  ;;  %v1269_v13 = vld [vmem:[#allocation2 + $0xb0] sm:$0xff]  }
  0xab   :  { %v1457_v15 = vmul.u32.u64.low %v119_v10, %v118_v14  ;;  %v1458_v16 = vmul.u32.u64.high %v119_v10, %v118_v14, %v1457_v15  ;;  %v1270_v14 = vld [vmem:[#allocation2 + $0xf0] sm:$0xff]   ;;  %vm925_vm3 = vcmask 130048   ;;  %vm988_vm5 = vcmask 392192  }
  0xac   :  { %v129_v21 = vadd.s32 1, %v1461_v18 }
  0xad   :  { %vm128_vm6 = vc.u32 %v1458_v16, %v1460_v17  ;;  %v127_v35 = vadd.s32 %v1460_v17, %v1458_v16  ;;  %v1272_v17 = vld [vmem:[#allocation2 + $0xe8] sm:$0xff]  }
  0xae   :  { %v130_v23 = vsel %vm128_vm6, %v129_v21, %v1461_v18  ;;  %v1273_v21 = vld [vmem:[#allocation2 + $0xa0] sm:$0xff]   ;;  %vm990_vm6 = vcmask 523264  }
  0xaf   :  { %v131_v24 = vadd.s32 %v130_v23, %v126_v22  ;;  %v1274_v22 = vld [vmem:[#allocation2 + $0xe0] sm:$0xff]  }
  0xb1   :  { %v132_v25 = vadd.s32 536870912, %v131_v24 }
  0xb3   :  { %v133_v26 = vshrl.u32 %v132_v25, 30  ;;  %v1275_v25 = vld [vmem:[#allocation2 + $0x98] sm:$0xff]  }
  0xb5   :  { %v134_v27 = vshll.u32 %v133_v26, 30  ;;  %v157_v49 = vsub.s32 4, %v133_v26 }
  0xb7   :  { %v135_v28 = vsub.s32 %v131_v24, %v134_v27  ;;  %v158_v52 = vsel %vm73_vm8, %v157_v49, %v133_v26  ;;  %v1276_v26 = vld [vmem:[#allocation2 + $0xd8] sm:$0xff]   ;;  %v1287_v49 = vld [vmem:[%s1563_s5 + $0x28] sm:$0xff]  }
  0xb8   :  { %v160_v53 = vsel %vm72_vm9, 0, %v158_v52  ;;  %v1290_v52 = vld [vmem:[%s1563_s5 + $0x10] sm:$0xff]  }
  0xb9   :  { %v137_v29 = vsub.s32 0, %v135_v28  ;;  %v164_v54 = vadd.s32 3, %v160_v53  ;;  %v268_v56 = vand.u32 3, %v160_v53  ;;  %v1291_v53 = vld [vmem:[%s1563_s5 + $0x8] sm:$0xff]  }
  0xbb   :  { %v1009_v30 = vmin.u32 %v137_v29, %v135_v28  ;;  %v165_v55 = vand.u32 3, %v164_v54  ;;  %vm273_vm11 = vcmp.eq.s32.totalorder %v268_v56, 2  ;;  %vm270_vm13 = vcmp.eq.s32.totalorder %v268_v56, 0  ;;  %v1278_v29 = vld [vmem:[#allocation2 + $0xd0] sm:$0xff]   ;;  %v1292_v54 = vld [vmem:[%s1563_s5] sm:$0xff]  }
  0xbc   :  { %vm269_vm15 = vcmp.lt.s32.totalorder %v268_v56, 2 }
  0xbd   :  { %v139_v32 = vclz %v1009_v30  ;;  %vm170_vm10 = vcmp.eq.s32.totalorder %v165_v55, 2  ;;  %vm167_vm12 = vcmp.eq.s32.totalorder %v165_v55, 0  ;;  %vm166_vm14 = vcmp.lt.s32.totalorder %v165_v55, 2 }
  0xbf   :  { %v1010_v33 = vadd.s32 4294967294, %v139_v32 }
  0xc1   :  { %vm1011_vm7 = vcmp.lt.s32.totalorder %v1010_v33, 0 }
  0xc2   :  { %v142_v34 = vsel %vm1011_vm7, 0, %v1010_v33  ;;  %v1279_v33 = vld [vmem:[#allocation2 + $0x88] sm:$0xff]  }
  0xc3   :  { %v143_v37 = vsub.s32 32, %v142_v34  ;;  %v147_v38 = vsub.s32 4294967266, %v142_v34  ;;  %v144_v39 = vshll.u32 %v135_v28, %v142_v34  ;;  %v1277_v28 = vld [vmem:[#allocation2 + $0x90] sm:$0xff]   ;;  %v1280_v34 = vld [vmem:[#allocation2 + $0xc8] sm:$0xff]  }
  0xc5   :  { %v145_v40 = vshrl.u32 %v127_v35, %v143_v37  ;;  %v148_v41 = vadd.s32 127, %v147_v38  ;;  %v1281_v38 = vld [vmem:[#allocation2 + $0x80] sm:$0xff]  }
  0xc7   :  { %v146_v42 = vor.u32 %v145_v40, %v144_v39  ;;  %v149_v43 = vshll.u32 %v148_v41, 23  ;;  %v1282_v39 = vld [vmem:[#allocation2 + $0xc0] sm:$0xff]  }
  0xc9   :  { %v150_v44 = vor.u32 4788187, %v149_v43  ;;  %v153_v46 = vcvt.s32.f32 %v146_v42  ;;  %v1283_v42 = vld [vmem:[%s1561_s3 + $0x8] sm:$0xff]  }
  0xcb   :  { %v151_v45 = vand.u32 2147483647, %v150_v44 }
  0xcd   :  { %v154_v47 = vmul.f32 %v153_v46, %v151_v45  ;;  %v1284_v45 = vld [vmem:[%s1561_s3] sm:$0xff]   ;;  %v49_v46 = vpack.c.bf16 %v1421_v1, %v1421_v1 }
  0xcf   :  { %v155_v48 = vxor.u32 2147483648, %v154_v47 }
  0xd1   :  { %v156_v50 = vsel %vm73_vm8, %v155_v48, %v154_v47  ;;  %v1285_v47 = vld [vmem:[%s1563_s5 + $0x38] sm:$0xff]   ;;  %v1286_v48 = vld [vmem:[%s1563_s5 + $0x30] sm:$0xff]  }
  0xd2   :  { %v159_v51 = vsel %vm72_vm9, %v1451_v31, %v156_v50  ;;  %v1271_v31 = vld [vmem:[#allocation2 + $0xa8] sm:$0xff]   ;;  %v1288_v50 = vld [vmem:[%s1563_s5 + $0x20] sm:$0xff]  }
  0xd3   :  { %1294 = vcosq.f32 %v159_v51 }
  0xd4   :  { %1296 = vsinq.f32 %v159_v51  ;;  %v1289_v51 = vld [vmem:[%s1563_s5 + $0x18] sm:$0xff]  }
  0xe0   :  { %v1295_v57 = vpop.eup %1294 }
  0xe1   :  { %v1297_v58 = vpop.eup %1296  ;;  %v171_v59 = vxor.u32 2147483648, %v1295_v57 }
  0xe2   :  { %v168_v60 = vxor.u32 2147483648, %v1297_v58 }
  0xe3   :  { %v172_v61 = vsel %vm170_vm10, %v171_v59, %v1297_v58  ;;  %v275_v62 = vsel %vm273_vm11, %v171_v59, %v1297_v58 }
  0xe4   :  { %v169_v36 = vsel %vm167_vm12, %v1295_v57, %v168_v60  ;;  %v272_v63 = vsel %vm270_vm13, %v1295_v57, %v168_v60 }
  0xe5   :  { %v173_v0 = vsel %vm166_vm14, %v169_v36, %v172_v61  ;;  %v276_v2 = vsel %vm269_vm15, %v272_v63, %v275_v62 }
  0xe6   :  { %v174_v3 = vsel %vm163_vm1, nan, %v173_v0  ;;  %v277_v4 = vsel %vm163_vm1, nan, %v276_v2 }
  0xe7   :  { %v278_v8 = vmul.f32 2.0, %v174_v3  ;;  %v359_v9 = vpack.c.bf16 %v277_v4, %v277_v4  ;;  %v358_v10 = vpack.c.bf16 %v174_v3, %v174_v3 }
  0xe9   :  { %v279_v11 = vmul.f32 %v278_v8, %v277_v4  ;;  %v280_v12 = vmul.f32 %v278_v8, %v174_v3  ;;  %1131 = vmatmul.mubr.bf16.vlgmr.msra.gmra.mxu0 %v359_v9  ;;  %1151 = vmatmul.mubr.bf16.vlgmr.msra.gmra.mxu1 %v358_v10 }
  0xea   :  { %1155 = vmatpush3.bf16.msra.mxu0 %v1267_v6  ;;  %1175 = vmatpush3.bf16.msra.mxu1 %v1268_v7 }
  0xeb   :  { %v281_v15 = vsub.f32 1.0, %v280_v12  ;;  %v282_v16 = vmul.f32 2.0, %v279_v11  ;;  %1156 = vmatprep.subr.bf16.mxu0 %v1353_v5  ;;  %1176 = vmatprep.subr.bf16.mxu1 %v1353_v5 }
  0xec   :  { %1170 = vmatprep.mubr.msk.bf16.mxu0 %vm1354_vm0, %v1353_v5  ;;  %1190 = vmatprep.mubr.msk.bf16.mxu1 %vm1354_vm0, %v1353_v5 }
  0xed   :  { %v283_v18 = vmul.f32 %v282_v16, %v281_v15  ;;  %v284_v19 = vmul.f32 %v282_v16, %v279_v11  ;;  %v1051_v11 = vld [vmem:[%s1562_s4] ss:$0 sm:$0xff]  ;;  %s1361_s4 = smov 112  }
  0xee   :  { %1157 = vmatpush3.bf16.msra.mxu0 %v1269_v13  ;;  %1177 = vmatpush3.bf16.msra.mxu1 %v1270_v14 }
  0xef   :  { %1158 = vmatprep.subr.bf16.mxu0 %v1353_v5  ;;  %1178 = vmatprep.subr.bf16.mxu1 %v1353_v5  ;;  %v285_v23 = vsub.f32 1.0, %v284_v19  ;;  %v286_v24 = vmul.f32 2.0, %v283_v18  ;;  %v1293_v19 = vld [vmem:[%s1565_s7] sm:$0xff]  }
  0xf1   :  { %v287_v27 = vmul.f32 %v286_v24, %v285_v23  ;;  %v288_v30 = vmul.f32 %v286_v24, %v283_v18 }
  0xf2   :  { %1159 = vmatpush3.bf16.msra.mxu0 %v1271_v31  ;;  %1179 = vmatpush3.bf16.msra.mxu1 %v1272_v17 }
  0xf3   :  { %1160 = vmatprep.subr.bf16.mxu0 %v1353_v5  ;;  %1180 = vmatprep.subr.bf16.mxu1 %v1353_v5  ;;  %v290_v32 = vmul.f32 2.0, %v287_v27  ;;  %v289_v35 = vsub.f32 1.0, %v288_v30 }
  0xf5   :  { %v292_v37 = vmul.f32 %v290_v32, %v287_v27  ;;  %v291_v40 = vmul.f32 %v290_v32, %v289_v35  ;;  %v1061_v35 = vld [vmem:[%s1566_s8] ss:$0 sm:$0xff]  ;;  %s1324_s8 = scalar_lea.vmem %s1000_s20, 128 }
  0xf6   :  { %1161 = vmatpush3.bf16.msra.mxu0 %v1273_v21  ;;  %1181 = vmatpush3.bf16.msra.mxu1 %v1274_v22  ;;  %v1052_v21 = vld [vmem:[%s1564_s6] ss:$0 sm:$0xff]  ;;  %s1363_s6 = smov 48   ;;  %p1325_p5 = scmp.ne.s32.totalorder %s1000_s20, %s1324_s8 }
  0xf7   :  { %1162 = vmatprep.subr.bf16.mxu0 %v1353_v5  ;;  %1182 = vmatprep.subr.bf16.mxu1 %v1353_v5  ;;  %v293_v41 = vsub.f32 1.0, %v292_v37  ;;  %v536_v43 = vpack.c.bf16 %v291_v40, %v291_v40  ;;  %p1330_p7 = scmp.lt.s32.totalorder %s1324_s8, %s1324_s8 }
  0xf9   :  { %v626_v44 = vpack.c.bf16 %v293_v41, %v293_v41  ;;  %p1331_p8 = por %p1330_p7, %p1329_p6 }
  0xfa   :  { %1163 = vmatpush3.bf16.msra.mxu0 %v1275_v25  ;;  %1183 = vmatpush3.bf16.msra.mxu1 %v1276_v26 }
  0xfb   :  { %1164 = vmatprep.subr.bf16.mxu0 %v1353_v5  ;;  %1184 = vmatprep.subr.bf16.mxu1 %v1353_v5  ;;  %p1332_p9 = pnand %p1331_p8, %p1325_p5 }
  0xfe   :  { %1165 = vmatpush3.bf16.msra.mxu0 %v1277_v28  ;;  %1185 = vmatpush3.bf16.msra.mxu1 %v1278_v29 }
  0xff   :  { %1166 = vmatprep.subr.bf16.mxu0 %v1353_v5  ;;  %1186 = vmatprep.subr.bf16.mxu1 %v1353_v5 }
 0x102   :  { %1167 = vmatpush3.bf16.msra.mxu0 %v1279_v33  ;;  %1187 = vmatpush3.bf16.msra.mxu1 %v1280_v34 }
 0x103   :  { %1168 = vmatprep.subr.bf16.mxu0 %v1353_v5  ;;  %1188 = vmatprep.subr.bf16.mxu1 %v1353_v5 }
 0x106   :  { %1169 = vmatpush3.bf16.msra.mxu0 %v1281_v38  ;;  %1189 = vmatpush3.bf16.msra.mxu1 %v1282_v39 }
 0x107   :  { %1194 = vmatprep.subr.bf16.mxu0 %v1353_v5  ;;  %1202 = vmatprep.subr.bf16.mxu1 %v1353_v5 }
 0x109   :  { %1171 = vmatmul.mubr.bf16.vlgmr.msra.gmra.mxu0 %v536_v43  ;;  %1191 = vmatmul.mubr.bf16.vlgmr.msra.gmra.mxu1 %v626_v44 }
 0x10a   :  { %1195 = vmatpush3.bf16.msra.mxu0 %v1283_v42  ;;  %1198 = vmatprep.mubr.msk.bf16.mxu0 %vm1354_vm0, %v1353_v5 }
 0x10b   :  { %1196 = vmatprep.subr.bf16.mxu0 %v1353_v5  ;;  %1218 = vmatprep.mubr.msk.bf16.mxu1 %vm1354_vm0, %v1353_v5 }
 0x10c   :  { %1203 = vmatpush3.bf16.msra.mxu1 %v1285_v47 }
 0x10d   :  { %1204 = vmatprep.subr.bf16.mxu1 %v1353_v5 }
 0x10e   :  { %1197 = vmatpush3.bf16.msra.mxu0 %v1284_v45  ;;  %v976_v45 = vand.u32 127, %v56_v20 }
 0x10f   :  { %1222 = vmatprep.subr.bf16.mxu0 %v1353_v5 }
 0x110   :  { %1205 = vmatpush3.bf16.msra.mxu1 %v1286_v48  ;;  %vm977_vm4 = vcmp.lt.s32.totalorder %v976_v45, 12 }
 0x111   :  { %1199 = vmatmul.mubr.msk.bf16.vlgmr.msra.gmra.mxu0 %vm732_vm2, %v49_v46  ;;  %1206 = vmatprep.subr.bf16.mxu1 %v1353_v5 }
 0x112   :  { %1224 = vmatprep.mubr.msk.bf16.mxu0 %vm1354_vm0, %v1353_v5  ;;  %1223 = vmatpush3.bf16.msra.mxu0 %v1293_v19 }
 0x114   :  { %1207 = vmatpush3.bf16.msra.mxu1 %v1287_v49 }
 0x115   :  { %1208 = vmatprep.subr.bf16.mxu1 %v1353_v5 }
 0x118   :  { %1209 = vmatpush3.bf16.msra.mxu1 %v1288_v50 }
 0x119   :  { %1210 = vmatprep.subr.bf16.mxu1 %v1353_v5 }
 0x11c   :  { %1211 = vmatpush3.bf16.msra.mxu1 %v1289_v51 }
 0x11d   :  { %1212 = vmatprep.subr.bf16.mxu1 %v1353_v5 }
 0x120   :  { %1213 = vmatpush3.bf16.msra.mxu1 %v1290_v52 }
 0x121   :  { %1214 = vmatprep.subr.bf16.mxu1 %v1353_v5 }
 0x124   :  { %1215 = vmatpush3.bf16.msra.mxu1 %v1291_v53 }
 0x125   :  { %1216 = vmatprep.subr.bf16.mxu1 %v1353_v5 }
 0x128   :  { %1217 = vmatpush3.bf16.msra.mxu1 %v1292_v54 }
 0x1a9   :  { %v442_v55 = vpop.f32.mrf.mxu0  ;;  %v530_v56 = vpop.f32.mrf.mxu1 }
 0x1aa   :  { %v531_v0 = vadd.f32 %v530_v56, %v442_v55 }
 0x1ab   :  { %v1132_v57 = vpop.f32.mrf.mxu0  ;;  %v1152_v58 = vpop.f32.mrf.mxu1 }
 0x1ad   :  { %v445_v59 = vpop.f32.mrf.mxu0  ;;  %v533_v60 = vpop.f32.mrf.mxu1 }
 0x1af   :  { %v1133_v61 = vpop.f32.mrf.mxu0  ;;  %v1153_v62 = vpop.f32.mrf.mxu1 }
 0x1c9   :  { %v619_v36 = vpop.f32.mrf.mxu0  ;;  %v709_v63 = vpop.f32.mrf.mxu1 }
 0x1ca   :  { %v625_v4 = vadd.f32 %v619_v36, %v531_v0 }
 0x1cb   :  { %v1172_v2 = vpop.f32.mrf.mxu0  ;;  %v1192_v3 = vpop.f32.mrf.mxu1 }
 0x1cc   :  { %v715_v9 = vadd.f32 %v709_v63, %v625_v4 }
 0x1cd   :  { %v622_v5 = vpop.f32.mrf.mxu0  ;;  %v712_v6 = vpop.f32.mrf.mxu1 }
 0x1cf   :  { %v1173_v7 = vpop.f32.mrf.mxu0  ;;  %v1193_v8 = vpop.f32.mrf.mxu1 }
 0x1d1   :  { %v770_v10 = vpop.f32.mrf.mxu0 }
 0x1d2   :  { %v776_v12 = vadd.f32 %v770_v10, %v715_v9 }
 0x1d3   :  { %v1200_v13 = vpop.f32.mrf.mxu0 }
 0x1d4   :  { %v784_v14 = vadd.f32 %v1051_v11, %v776_v12 }
 0x1d5   :  { %v773_v15 = vpop.f32.mrf.mxu0 }
 0x1d6   :  { %vm785_vm0 = vcmp.ge.f32.partialorder %v784_v14, 0.0  ;;  %v786_v16 = vmul.f32 0.2, %v784_v14 }
 0x1d7   :  { %v1201_v31 = vpop.f32.mrf.mxu0 }
 0x1d8   :  { %v787_v17 = vsel %vm785_vm0, %v784_v14, %v786_v16 }
 0x1d9   :  { %v788_v18 = vpack.c.bf16 %v787_v17, %v787_v17 }
 0x1db   :  { %1219 = vmatmul.mubr.bf16.vlgmr.msra.gmra.mxu1 %v788_v18 }
 0x29b   :  { %v894_v22 = vpop.f32.mrf.mxu1 }
 0x29c   :  { %v895_v23 = vadd.f32 %v1052_v21, %v894_v22 }
 0x29d   :  { %v1220_v24 = vpop.f32.mrf.mxu1 }
 0x29e   :  { %v900_v25 = vmul.f32 0.5, %v895_v23 }
 0x29f   :  { %v897_v26 = vpop.f32.mrf.mxu1 }
 0x2a0   :  { %v901_v27 = vmul.f32 1.442695, %v900_v25 }
 0x2a1   :  { %v1221_v28 = vpop.f32.mrf.mxu1 }
 0x2a2   :  { %1298 = vpow2.f32 %v901_v27 }
 0x2af   :  { %v1299_v29 = vpop.eup %1298 }
 0x2b0   :  { %v903_v30 = vmul.f32 %v1299_v29, %v1421_v1 }
 0x2b2   :  { %905 = vrot.lane.b32.xlu1 %v903_v30, %s1361_s4 }
 0x2b6   :  { %980 = vrot.lane.b32.xlu1 %v895_v23, %s1362_s1 }
 0x324   :  { %v906_v32 = vpop.permute.xlu1 %905 }
 0x325   :  { %v908_v33 = vadd.f32 %v906_v32, %v895_v23 }
 0x327   :  { %v909_v34 = vpack.c.bf16 %v908_v33, %v908_v33  ;;  %984 = vrot.lane.b32.xlu1 %v908_v33, %s1363_s6 }
 0x328   :  { %v981_v46 = vpop.permute.xlu1 %980 }
 0x329   :  { %1225 = vmatmul.mubr.msk.bf16.vlgmr.msra.gmra.mxu0 %vm925_vm3, %v909_v34 }
 0x399   :  { %v985_v49 = vpop.permute.xlu1 %984 }
 0x3e9   :  { %v963_v37 = vpop.f32.mrf.mxu0 }
 0x3ea   :  { %v964_v38 = vadd.f32 %v1061_v35, %v963_v37 }
 0x3eb   :  { %v1226_v39 = vpop.f32.mrf.mxu0 }
 0x3ec   :  { %v969_v1 = vsub.f32 0.0, %v964_v38 }
 0x3ed   :  { %v966_v40 = vpop.f32.mrf.mxu0 }
 0x3ee   :  { %v970_v41 = vmul.f32 1.442695, %v969_v1 }
 0x3ef   :  { %v1227_v42 = vpop.f32.mrf.mxu0 }
 0x3f0   :  { %1300 = vpow2.f32 %v970_v41 }
 0x3fd   :  { %v1301_v43 = vpop.eup %1300 }
 0x3fe   :  { %v972_v44 = vadd.f32 1.0, %v1301_v43 }
 0x400   :  { %1302 = vrcp.f32 %v972_v44 }
 0x40d   :  { %v1303_v47 = vpop.eup %1302 }
 0x40e   :  { %v978_v48 = vsel %vm977_vm4, %v1303_v47, %v964_v38 }
 0x40f   :  { %v987_v50 = vsel %vm925_vm3, %v978_v48, %v981_v46 }
 0x410   :  { %v989_v51 = vsel %vm988_vm5, %v987_v50, %v985_v49 }
 0x411   :  { %v991_v52 = vsel %vm990_vm6, %v989_v51, 0.0 }
 0x412   :  { %992 = vst [vmem:[#allocation5] sm:$0xff] %v991_v52 }
 0x413   :  { %1335 = shalt.err (!%p1332_p9)
}
 0x414   :  { %1002 = dma.vmem_to_hbm [thread:$0]  %s1000_s20, 128, %s1567_s9, [#allocation4]  }
 0x415   :  { %1346 = dma.done.wait [#allocation4], 128  }
 0x416   :  { %1347 = vsyncadd [#allocation4], 4294967168 }
 0x417   :  { %1006 = vsyncpa [#allocation3], 1 }
 0x418   :  { %1007 = vsyncpa [#allocation4], 1 }

</bundles_post_ra>
